<compile_context>
chip_gen: v5e
topology: v5e:2x2
jax: 0.10.0
libtpu: 0.0.40
codegen_flags: <defaults>
</compile_context>

<pallas_src>
import functools
import math

import jax
import jax.numpy as jnp
from jax.experimental import pallas as pl
from jax.experimental.pallas import tpu as pltpu

# ---------------- model dimensions ------------------------------------------
BATCH = 2
MAX_SEQ_LEN = 8          # number of transformer tokens (window size)
PATCH_SIZE = 2           # data points folded into one token
D_DATA = 4               # raw feature dim
D_IN = PATCH_SIZE * D_DATA      # 8  : input dim of linear_embedding
D_EMBED = 32             # transformer embedding dim
N_HEADS = 4
D_HEAD = D_EMBED // N_HEADS
D_FF = 64                # transformer FFN hidden dim
D_MLP = 32               # mlp_layers hidden dim
D_OUT = PATCH_SIZE * D_DATA     # 8  : output dim per token
DATA_SEQ_LEN = PATCH_SIZE * MAX_SEQ_LEN
LN_EPS = 1e-5
ATTN_SCALE = 1.0 / math.sqrt(D_HEAD)

LANES = 128              # slab lane width

# ---------------- fused parameter slab layout (static) ----------------------
# Multi-row weight blocks first (8-row aligned start), 1-row vectors last.
_FUSED_SHAPES = (
    ("we",   (D_IN, D_EMBED)),
    ("wqkv", (D_EMBED, 3 * D_EMBED)),   # [WQ*scale | WK | WV]
    ("wo",   (D_EMBED, D_EMBED)),
    ("wf1",  (D_EMBED, D_FF)),
    ("wf2",  (D_FF, D_EMBED)),
    ("m1",   (D_EMBED, D_MLP)),
    ("m2",   (D_MLP, D_OUT)),
    ("be",   (1, D_EMBED)),
    ("bqkv", (1, 3 * D_EMBED)),         # [bq*scale | bk | bv]
    ("bo",   (1, D_EMBED)),
    ("g1",   (1, D_EMBED)),
    ("bt1",  (1, D_EMBED)),
    ("bf1",  (1, D_FF)),
    ("bf2",  (1, D_EMBED)),
    ("g2",   (1, D_EMBED)),
    ("bt2",  (1, D_EMBED)),
    ("mb1",  (1, D_MLP)),
    ("mb2",  (1, D_OUT)),
)
_SHAPE_D = dict(_FUSED_SHAPES)


def _build_layout():
    offsets = {}
    r = 0
    for name, (nr, _) in _FUSED_SHAPES:
        if nr > 1:
            offsets[name] = r
            r += nr
    for name, (nr, _) in _FUSED_SHAPES:
        if nr == 1:
            offsets[name] = r
            r += nr
    total = ((r + 7) // 8) * 8
    return offsets, total


_OFFSETS, PARAM_ROWS = _build_layout()


def pack_params(params):
    """Canonical (unfused) params -> one (PARAM_ROWS, 128) fp32 slab.

    Folds the 1/sqrt(d_head) softmax scale into WQ/bq and fuses Q/K/V.
    """
    (we, be, wq, bq, wk, bk, wv, bv, wo, bo,
     g1, bt1, wf1, bf1, wf2, bf2, g2, bt2, m1, mb1, m2, mb2) = params
    fused = {
        "we": we, "be": be,
        "wqkv": jnp.concatenate([wq * ATTN_SCALE, wk, wv], axis=1),
        "bqkv": jnp.concatenate([bq * ATTN_SCALE, bk, bv], axis=1),
        "wo": wo, "bo": bo,
        "g1": g1, "bt1": bt1,
        "wf1": wf1, "bf1": bf1, "wf2": wf2, "bf2": bf2,
        "g2": g2, "bt2": bt2,
        "m1": m1, "mb1": mb1, "m2": m2, "mb2": mb2,
    }
    slab = jnp.zeros((PARAM_ROWS, LANES), jnp.float32)
    for name, (nr, nc) in _FUSED_SHAPES:
        r = _OFFSETS[name]
        slab = slab.at[r:r + nr, :nc].set(fused[name].astype(jnp.float32))
    return slab


# ---------------- shared math ------------------------------------------------
def _layernorm(x, g, b):
    mu = jnp.mean(x, axis=-1, keepdims=True)
    var = jnp.mean((x - mu) ** 2, axis=-1, keepdims=True)
    return (x - mu) * jax.lax.rsqrt(var + LN_EPS) * g + b


# ---------------- Pallas kernel (single invocation, whole batch) ------------
def _anomaly_transformer_kernel(slab_ref, out_ref, *, n_batch):
    f32 = jnp.float32

    def rd(name):
        r = _OFFSETS[name]
        nr, nc = _SHAPE_D[name]
        return slab_ref[r:r + nr, 0:nc]

    we, be = rd("we"), rd("be")
    wqkv, bqkv = rd("wqkv"), rd("bqkv")
    wo, bo = rd("wo"), rd("bo")
    g1, bt1 = rd("g1"), rd("bt1")
    wf1, bf1 = rd("wf1"), rd("bf1")
    wf2, bf2 = rd("wf2"), rd("bf2")
    g2, bt2 = rd("g2"), rd("bt2")
    m1, mb1 = rd("m1"), rd("mb1")
    m2, mb2 = rd("m2"), rd("mb2")

    tokens = n_batch * MAX_SEQ_LEN
    x = slab_ref[PARAM_ROWS:PARAM_ROWS + tokens, 0:D_IN]      # (T, D_IN)

    # linear embedding
    h = jnp.dot(x, we, preferred_element_type=f32) + be        # (T, 32)

    # fused QKV projection (Q already carries the 1/sqrt(d_head) scale)
    qkv = jnp.dot(h, wqkv, preferred_element_type=f32) + bqkv  # (T, 96)
    q = qkv[:, 0:D_EMBED]
    k = qkv[:, D_EMBED:2 * D_EMBED]
    v = qkv[:, 2 * D_EMBED:3 * D_EMBED]

    # heads -> leading batch dim (head-major), built only from lane slices +
    # leading-axis concatenation (no lane-dim reshape / 4-D transpose).
    def to_heads(t):                                           # (T, 32) -> (NH*nb, S, DH)
        t3 = t.reshape(n_batch, MAX_SEQ_LEN, D_EMBED)
        return jnp.concatenate(
            [t3[:, :, hh * D_HEAD:(hh + 1) * D_HEAD] for hh in range(N_HEADS)],
            axis=0)

    qh, kh, vh = to_heads(q), to_heads(k), to_heads(v)

    # one scores einsum + one PV einsum over all heads/batches
    s = jnp.einsum('bqd,bkd->bqk', qh, kh, preferred_element_type=f32)
    s = s - jnp.max(s, axis=-1, keepdims=True)
    p = jnp.exp(s)
    o = jnp.einsum('bqk,bkd->bqd', p, vh, preferred_element_type=f32)
    o = o / jnp.sum(p, axis=-1, keepdims=True)                 # exact normalization

    # merge heads back into the lane dimension
    attn3 = jnp.concatenate(
        [o[hh * n_batch:(hh + 1) * n_batch] for hh in range(N_HEADS)], axis=-1)
    attn = attn3.reshape(tokens, D_EMBED)
    attn = jnp.dot(attn, wo, preferred_element_type=f32) + bo

    # post-LN transformer encoder layer
    h = _layernorm(h + attn, g1, bt1)
    ff = jnp.dot(h, wf1, preferred_element_type=f32) + bf1
    ff = jax.nn.gelu(ff)
    ff = jnp.dot(ff, wf2, preferred_element_type=f32) + bf2
    h = _layernorm(h + ff, g2, bt2)

    # output MLP
    m = jnp.dot(h, m1, preferred_element_type=f32) + mb1
    m = jax.nn.gelu(m)
    out = jnp.dot(m, m2, preferred_element_type=f32) + mb2

    out_ref[...] = out.astype(out_ref.dtype)


def _cost_estimate(n_batch):
    t = n_batch * MAX_SEQ_LEN
    x_rows = ((t + 7) // 8) * 8
    flops = (
        2 * t * D_IN * D_EMBED                                   # embedding
        + 2 * t * D_EMBED * (3 * D_EMBED)                        # fused QKV
        + 2 * 2 * n_batch * N_HEADS * MAX_SEQ_LEN * MAX_SEQ_LEN * D_HEAD  # attn
        + 2 * t * D_EMBED * D_EMBED                              # out proj
        + 2 * t * D_EMBED * D_FF + 2 * t * D_FF * D_EMBED        # FFN
        + 2 * t * D_EMBED * D_MLP + 2 * t * D_MLP * D_OUT        # MLP
    )
    transcendentals = (
        n_batch * N_HEADS * MAX_SEQ_LEN * MAX_SEQ_LEN            # softmax exp
        + t * (D_FF + D_MLP)                                     # gelu tanh
        + 2 * t                                                  # layernorm rsqrt
    )
    bytes_accessed = 4 * ((PARAM_ROWS + x_rows) * LANES + t * D_OUT)
    return pl.CostEstimate(flops=flops, transcendentals=transcendentals,
                           bytes_accessed=bytes_accessed)


def anomaly_transformer_forward(x, param_slab):
    """x: (n_batch, max_seq_len*patch_size, d_data) -> same shape output."""
    n_batch = x.shape[0]
    tokens = n_batch * MAX_SEQ_LEN
    # view(n_batch, max_seq_len, patch_size, -1).view(n_batch, max_seq_len, -1),
    # batch fused into the matmul M dimension:
    x2d = x.reshape(tokens, D_IN).astype(jnp.float32)

    # Append the (lane-padded) activations to the parameter slab so the kernel
    # has exactly one lane-dense VMEM input DMA.
    x_rows = ((tokens + 7) // 8) * 8
    x_pad = jnp.zeros((x_rows, LANES), jnp.float32).at[:tokens, :D_IN].set(x2d)
    slab = jnp.concatenate([param_slab, x_pad], axis=0)

    out2d = pl.pallas_call(
        functools.partial(_anomaly_transformer_kernel, n_batch=n_batch),
        out_shape=jax.ShapeDtypeStruct((tokens, D_OUT), jnp.float32),
        in_specs=[pl.BlockSpec(memory_space=pltpu.MemorySpace.VMEM)],
        out_specs=pl.BlockSpec(memory_space=pltpu.MemorySpace.VMEM),
        cost_estimate=_cost_estimate(n_batch),
    )(slab)

    # view(n_batch, max_seq_len, patch_size, -1).view(n_batch, data_seq_len, -1)
    return out2d.reshape(n_batch, DATA_SEQ_LEN, D_DATA)


# ---------------- pure-JAX reference (unfused params, straightforward math) --
def anomaly_transformer_reference(x, params):
    (we, be, wq, bq, wk, bk, wv, bv, wo, bo,
     g1, bt1, wf1, bf1, wf2, bf2, g2, bt2, m1, mb1, m2, mb2) = params
    n_batch = x.shape[0]
    xt = x.reshape(n_batch, MAX_SEQ_LEN, D_IN)

    h = xt @ we + be
    q = (h @ wq + bq) * ATTN_SCALE
    k = h @ wk + bk
    v = h @ wv + bv

    heads = []
    for hh in range(N_HEADS):
        sl = slice(hh * D_HEAD, (hh + 1) * D_HEAD)
        qh, kh, vh = q[..., sl], k[..., sl], v[..., sl]
        s = jnp.einsum('bqd,bkd->bqk', qh, kh)
        s = s - jnp.max(s, axis=-1, keepdims=True)
        p = jnp.exp(s)
        p = p / jnp.sum(p, axis=-1, keepdims=True)
        heads.append(jnp.einsum('bqk,bkd->bqd', p, vh))
    attn = jnp.concatenate(heads, axis=-1)
    attn = attn @ wo + bo

    h = _layernorm(h + attn, g1, bt1)
    ff = jax.nn.gelu(h @ wf1 + bf1)
    ff = ff @ wf2 + bf2
    h = _layernorm(h + ff, g2, bt2)

    m = jax.nn.gelu(h @ m1 + mb1)
    out = m @ m2 + mb2
    return out.reshape(n_batch, DATA_SEQ_LEN, D_DATA)


# ---------------- deterministic parameter init ------------------------------
def init_params(key):
    def dense(k, fan_in, fan_out):
        kw, kb = jax.random.split(k)
        w = jax.random.normal(kw, (fan_in, fan_out), jnp.float32) / math.sqrt(fan_in)
        b = 0.1 * jax.random.normal(kb, (1, fan_out), jnp.float32)
        return w, b

    ks = jax.random.split(key, 9)
    we, be = dense(ks[0], D_IN, D_EMBED)
    wq, bq = dense(ks[1], D_EMBED, D_EMBED)
    wk, bk = dense(ks[2], D_EMBED, D_EMBED)
    wv, bv = dense(ks[3], D_EMBED, D_EMBED)
    wo, bo = dense(ks[4], D_EMBED, D_EMBED)
    g1, bt1 = jnp.ones((1, D_EMBED), jnp.float32), jnp.zeros((1, D_EMBED), jnp.float32)
    wf1, bf1 = dense(ks[5], D_EMBED, D_FF)
    wf2, bf2 = dense(ks[6], D_FF, D_EMBED)
    g2, bt2 = jnp.ones((1, D_EMBED), jnp.float32), jnp.zeros((1, D_EMBED), jnp.float32)
    m1, mb1 = dense(ks[7], D_EMBED, D_MLP)
    m2, mb2 = dense(ks[8], D_MLP, D_OUT)
    return (we, be,
            wq, bq, wk, bk, wv, bv, wo, bo,
            g1, bt1,
            wf1, bf1, wf2, bf2,
            g2, bt2,
            m1, mb1, m2, mb2)


if __name__ == "__main__":
    key = jax.random.PRNGKey(0)
    kx, kp = jax.random.split(key)
    x = jax.random.normal(kx, (BATCH, DATA_SEQ_LEN, D_DATA), jnp.float32)
    params = init_params(kp)
    slab = pack_params(params)       # single (PARAM_ROWS, 128) fp32 slab

    out = anomaly_transformer_forward(x, slab)
    out = jax.block_until_ready(out)

    ref = anomaly_transformer_reference(x, params)
    assert out.shape == (BATCH, DATA_SEQ_LEN, D_DATA)
    max_err = float(jnp.max(jnp.abs(out - ref)))
    assert jnp.allclose(out, ref, rtol=2e-3, atol=2e-3), max_err

    print("KERNEL_OK")
</pallas_src>

<mosaic_0001>
module attributes {stable_mosaic.version = 11 : i64} {
  func.func @_anomaly_transformer_kernel(%arg0: memref<264x128xf32, #tpu.memory_space<vmem>>, %arg1: memref<16x8xf32, #tpu.memory_space<vmem>>) attributes {dimension_semantics = [], scalar_prefetch = 0 : i64, scratch_operands = 0 : i64, tpu.core_type = #tpu.core_type<tc>} {
    %c0 = arith.constant 0 : index
    %c0_0 = arith.constant 0 : index
    %0 = vector.load %arg0[%c0, %c0_0] : memref<264x128xf32, #tpu.memory_space<vmem>>, vector<8x32xf32>
    %c232 = arith.constant 232 : index
    %c0_1 = arith.constant 0 : index
    %1 = vector.load %arg0[%c232, %c0_1] : memref<264x128xf32, #tpu.memory_space<vmem>>, vector<1x32xf32>
    %c8 = arith.constant 8 : index
    %c0_2 = arith.constant 0 : index
    %2 = vector.load %arg0[%c8, %c0_2] : memref<264x128xf32, #tpu.memory_space<vmem>>, vector<32x96xf32>
    %c233 = arith.constant 233 : index
    %c0_3 = arith.constant 0 : index
    %3 = vector.load %arg0[%c233, %c0_3] : memref<264x128xf32, #tpu.memory_space<vmem>>, vector<1x96xf32>
    %c40 = arith.constant 40 : index
    %c0_4 = arith.constant 0 : index
    %4 = vector.load %arg0[%c40, %c0_4] : memref<264x128xf32, #tpu.memory_space<vmem>>, vector<32x32xf32>
    %c234 = arith.constant 234 : index
    %c0_5 = arith.constant 0 : index
    %5 = vector.load %arg0[%c234, %c0_5] : memref<264x128xf32, #tpu.memory_space<vmem>>, vector<1x32xf32>
    %c235 = arith.constant 235 : index
    %c0_6 = arith.constant 0 : index
    %6 = vector.load %arg0[%c235, %c0_6] : memref<264x128xf32, #tpu.memory_space<vmem>>, vector<1x32xf32>
    %c236 = arith.constant 236 : index
    %c0_7 = arith.constant 0 : index
    %7 = vector.load %arg0[%c236, %c0_7] : memref<264x128xf32, #tpu.memory_space<vmem>>, vector<1x32xf32>
    %c72 = arith.constant 72 : index
    %c0_8 = arith.constant 0 : index
    %8 = vector.load %arg0[%c72, %c0_8] : memref<264x128xf32, #tpu.memory_space<vmem>>, vector<32x64xf32>
    %c237 = arith.constant 237 : index
    %c0_9 = arith.constant 0 : index
    %9 = vector.load %arg0[%c237, %c0_9] : memref<264x128xf32, #tpu.memory_space<vmem>>, vector<1x64xf32>
    %c104 = arith.constant 104 : index
    %c0_10 = arith.constant 0 : index
    %10 = vector.load %arg0[%c104, %c0_10] : memref<264x128xf32, #tpu.memory_space<vmem>>, vector<64x32xf32>
    %c238 = arith.constant 238 : index
    %c0_11 = arith.constant 0 : index
    %11 = vector.load %arg0[%c238, %c0_11] : memref<264x128xf32, #tpu.memory_space<vmem>>, vector<1x32xf32>
    %c239 = arith.constant 239 : index
    %c0_12 = arith.constant 0 : index
    %12 = vector.load %arg0[%c239, %c0_12] : memref<264x128xf32, #tpu.memory_space<vmem>>, vector<1x32xf32>
    %c240 = arith.constant 240 : index
    %c0_13 = arith.constant 0 : index
    %13 = vector.load %arg0[%c240, %c0_13] : memref<264x128xf32, #tpu.memory_space<vmem>>, vector<1x32xf32>
    %c168 = arith.constant 168 : index
    %c0_14 = arith.constant 0 : index
    %14 = vector.load %arg0[%c168, %c0_14] : memref<264x128xf32, #tpu.memory_space<vmem>>, vector<32x32xf32>
    %c241 = arith.constant 241 : index
    %c0_15 = arith.constant 0 : index
    %15 = vector.load %arg0[%c241, %c0_15] : memref<264x128xf32, #tpu.memory_space<vmem>>, vector<1x32xf32>
    %c200 = arith.constant 200 : index
    %c0_16 = arith.constant 0 : index
    %16 = vector.load %arg0[%c200, %c0_16] : memref<264x128xf32, #tpu.memory_space<vmem>>, vector<32x8xf32>
    %c242 = arith.constant 242 : index
    %c0_17 = arith.constant 0 : index
    %17 = vector.load %arg0[%c242, %c0_17] : memref<264x128xf32, #tpu.memory_space<vmem>>, vector<1x8xf32>
    %c248 = arith.constant 248 : index
    %c0_18 = arith.constant 0 : index
    %18 = vector.load %arg0[%c248, %c0_18] : memref<264x128xf32, #tpu.memory_space<vmem>>, vector<16x8xf32>
    %cst = arith.constant dense<0.000000e+00> : vector<16x32xf32>
    %19 = tpu.matmul %18, %0, %cst {dimension_numbers = #tpu.dot_dimension_numbers<[1], [0], [0], [1], [0, 0, 1, 1], [], []>} : vector<16x8xf32>, vector<8x32xf32>, vector<16x32xf32> -> vector<16x32xf32>
    %20 = vector.broadcast %1 : vector<1x32xf32> to vector<16x32xf32>
    %21 = arith.addf %19, %20 : vector<16x32xf32>
    %cst_19 = arith.constant dense<0.000000e+00> : vector<16x96xf32>
    %22 = tpu.matmul %21, %2, %cst_19 {dimension_numbers = #tpu.dot_dimension_numbers<[1], [0], [0], [1], [0, 0, 1, 1], [], []>} : vector<16x32xf32>, vector<32x96xf32>, vector<16x96xf32> -> vector<16x96xf32>
    %23 = vector.broadcast %3 : vector<1x96xf32> to vector<16x96xf32>
    %24 = arith.addf %22, %23 : vector<16x96xf32>
    %25 = vector.extract_strided_slice %24 {offsets = [0, 0], sizes = [16, 32], strides = [1, 1]} : vector<16x96xf32> to vector<16x32xf32>
    %26 = vector.extract_strided_slice %24 {offsets = [0, 32], sizes = [16, 32], strides = [1, 1]} : vector<16x96xf32> to vector<16x32xf32>
    %27 = vector.extract_strided_slice %24 {offsets = [0, 64], sizes = [16, 32], strides = [1, 1]} : vector<16x96xf32> to vector<16x32xf32>
    %28 = vector.shape_cast %25 : vector<16x32xf32> to vector<2x8x32xf32>
    %29 = vector.extract_strided_slice %28 {offsets = [0, 0, 0], sizes = [2, 8, 8], strides = [1, 1, 1]} : vector<2x8x32xf32> to vector<2x8x8xf32>
    %30 = vector.extract_strided_slice %28 {offsets = [0, 0, 8], sizes = [2, 8, 8], strides = [1, 1, 1]} : vector<2x8x32xf32> to vector<2x8x8xf32>
    %31 = vector.extract_strided_slice %28 {offsets = [0, 0, 16], sizes = [2, 8, 8], strides = [1, 1, 1]} : vector<2x8x32xf32> to vector<2x8x8xf32>
    %32 = vector.extract_strided_slice %28 {offsets = [0, 0, 24], sizes = [2, 8, 8], strides = [1, 1, 1]} : vector<2x8x32xf32> to vector<2x8x8xf32>
    %33 = tpu.concatenate %29, %30, %31, %32 in 0 : vector<2x8x8xf32>, vector<2x8x8xf32>, vector<2x8x8xf32>, vector<2x8x8xf32> -> vector<8x8x8xf32>
    %34 = vector.shape_cast %26 : vector<16x32xf32> to vector<2x8x32xf32>
    %35 = vector.extract_strided_slice %34 {offsets = [0, 0, 0], sizes = [2, 8, 8], strides = [1, 1, 1]} : vector<2x8x32xf32> to vector<2x8x8xf32>
    %36 = vector.extract_strided_slice %34 {offsets = [0, 0, 8], sizes = [2, 8, 8], strides = [1, 1, 1]} : vector<2x8x32xf32> to vector<2x8x8xf32>
    %37 = vector.extract_strided_slice %34 {offsets = [0, 0, 16], sizes = [2, 8, 8], strides = [1, 1, 1]} : vector<2x8x32xf32> to vector<2x8x8xf32>
    %38 = vector.extract_strided_slice %34 {offsets = [0, 0, 24], sizes = [2, 8, 8], strides = [1, 1, 1]} : vector<2x8x32xf32> to vector<2x8x8xf32>
    %39 = tpu.concatenate %35, %36, %37, %38 in 0 : vector<2x8x8xf32>, vector<2x8x8xf32>, vector<2x8x8xf32>, vector<2x8x8xf32> -> vector<8x8x8xf32>
    %40 = vector.shape_cast %27 : vector<16x32xf32> to vector<2x8x32xf32>
    %41 = vector.extract_strided_slice %40 {offsets = [0, 0, 0], sizes = [2, 8, 8], strides = [1, 1, 1]} : vector<2x8x32xf32> to vector<2x8x8xf32>
    %42 = vector.extract_strided_slice %40 {offsets = [0, 0, 8], sizes = [2, 8, 8], strides = [1, 1, 1]} : vector<2x8x32xf32> to vector<2x8x8xf32>
    %43 = vector.extract_strided_slice %40 {offsets = [0, 0, 16], sizes = [2, 8, 8], strides = [1, 1, 1]} : vector<2x8x32xf32> to vector<2x8x8xf32>
    %44 = vector.extract_strided_slice %40 {offsets = [0, 0, 24], sizes = [2, 8, 8], strides = [1, 1, 1]} : vector<2x8x32xf32> to vector<2x8x8xf32>
    %45 = tpu.concatenate %41, %42, %43, %44 in 0 : vector<2x8x8xf32>, vector<2x8x8xf32>, vector<2x8x8xf32>, vector<2x8x8xf32> -> vector<8x8x8xf32>
    "tpu.trace_start"() <{level = 10 : i32, message = "bqd,bkd->bqk"}> : () -> ()
    %cst_20 = arith.constant dense<0.000000e+00> : vector<8x8x8xf32>
    %46 = tpu.matmul %33, %39, %cst_20 {dimension_numbers = #tpu.dot_dimension_numbers<[2], [2], [1], [1], [0, 0, 0, 1, 1, 1], [0], [0]>} : vector<8x8x8xf32>, vector<8x8x8xf32>, vector<8x8x8xf32> -> vector<8x8x8xf32>
    "tpu.trace_stop"() : () -> ()
    %cst_21 = arith.constant dense<0xFF800000> : vector<8x8xf32>
    %47 = vector.multi_reduction <maximumf>, %46, %cst_21 [2] : vector<8x8x8xf32> to vector<8x8xf32>
    %48 = vector.shape_cast %47 : vector<8x8xf32> to vector<8x8x1xf32>
    %49 = vector.broadcast %48 : vector<8x8x1xf32> to vector<8x8x8xf32>
    %50 = arith.subf %46, %49 : vector<8x8x8xf32>
    %51 = math.exp %50 : vector<8x8x8xf32>
    "tpu.trace_start"() <{level = 10 : i32, message = "bqk,bkd->bqd"}> : () -> ()
    %cst_22 = arith.constant dense<0.000000e+00> : vector<8x8x8xf32>
    %52 = tpu.matmul %51, %45, %cst_22 {dimension_numbers = #tpu.dot_dimension_numbers<[2], [1], [1], [2], [0, 0, 0, 1, 1, 2], [0], [0]>} : vector<8x8x8xf32>, vector<8x8x8xf32>, vector<8x8x8xf32> -> vector<8x8x8xf32>
    "tpu.trace_stop"() : () -> ()
    %cst_23 = arith.constant dense<0.000000e+00> : vector<8x8xf32>
    %53 = vector.multi_reduction <add>, %51, %cst_23 [2] : vector<8x8x8xf32> to vector<8x8xf32>
    %54 = vector.shape_cast %53 : vector<8x8xf32> to vector<8x8x1xf32>
    %55 = vector.broadcast %54 : vector<8x8x1xf32> to vector<8x8x8xf32>
    %56 = arith.divf %52, %55 : vector<8x8x8xf32>
    %57 = vector.extract_strided_slice %56 {offsets = [0, 0, 0], sizes = [2, 8, 8], strides = [1, 1, 1]} : vector<8x8x8xf32> to vector<2x8x8xf32>
    %58 = vector.extract_strided_slice %56 {offsets = [2, 0, 0], sizes = [2, 8, 8], strides = [1, 1, 1]} : vector<8x8x8xf32> to vector<2x8x8xf32>
    %59 = vector.extract_strided_slice %56 {offsets = [4, 0, 0], sizes = [2, 8, 8], strides = [1, 1, 1]} : vector<8x8x8xf32> to vector<2x8x8xf32>
    %60 = vector.extract_strided_slice %56 {offsets = [6, 0, 0], sizes = [2, 8, 8], strides = [1, 1, 1]} : vector<8x8x8xf32> to vector<2x8x8xf32>
    %61 = tpu.concatenate %57, %58, %59, %60 in 2 : vector<2x8x8xf32>, vector<2x8x8xf32>, vector<2x8x8xf32>, vector<2x8x8xf32> -> vector<2x8x32xf32>
    %62 = vector.shape_cast %61 : vector<2x8x32xf32> to vector<16x32xf32>
    %cst_24 = arith.constant dense<0.000000e+00> : vector<16x32xf32>
    %63 = tpu.matmul %62, %4, %cst_24 {dimension_numbers = #tpu.dot_dimension_numbers<[1], [0], [0], [1], [0, 0, 1, 1], [], []>} : vector<16x32xf32>, vector<32x32xf32>, vector<16x32xf32> -> vector<16x32xf32>
    %64 = vector.broadcast %5 : vector<1x32xf32> to vector<16x32xf32>
    %65 = arith.addf %63, %64 : vector<16x32xf32>
    %66 = arith.addf %21, %65 : vector<16x32xf32>
    %cst_25 = arith.constant dense<0.000000e+00> : vector<16xf32>
    %67 = vector.multi_reduction <add>, %66, %cst_25 [1] : vector<16x32xf32> to vector<16xf32>
    %68 = vector.shape_cast %67 : vector<16xf32> to vector<16x1xf32>
    %cst_26 = arith.constant 3.200000e+01 : f32
    %69 = vector.broadcast %cst_26 : f32 to vector<16x1xf32>
    %70 = arith.divf %68, %69 : vector<16x1xf32>
    %71 = vector.broadcast %70 : vector<16x1xf32> to vector<16x32xf32>
    %72 = arith.subf %66, %71 : vector<16x32xf32>
    %73 = arith.mulf %72, %72 : vector<16x32xf32>
    %cst_27 = arith.constant dense<0.000000e+00> : vector<16xf32>
    %74 = vector.multi_reduction <add>, %73, %cst_27 [1] : vector<16x32xf32> to vector<16xf32>
    %75 = vector.shape_cast %74 : vector<16xf32> to vector<16x1xf32>
    %cst_28 = arith.constant 3.200000e+01 : f32
    %76 = vector.broadcast %cst_28 : f32 to vector<16x1xf32>
    %77 = arith.divf %75, %76 : vector<16x1xf32>
    %78 = vector.broadcast %70 : vector<16x1xf32> to vector<16x32xf32>
    %79 = arith.subf %66, %78 : vector<16x32xf32>
    %cst_29 = arith.constant 9.99999974E-6 : f32
    %80 = vector.broadcast %cst_29 : f32 to vector<16x1xf32>
    %81 = arith.addf %77, %80 : vector<16x1xf32>
    %82 = math.rsqrt %81 : vector<16x1xf32>
    %83 = vector.broadcast %82 : vector<16x1xf32> to vector<16x32xf32>
    %84 = arith.mulf %79, %83 : vector<16x32xf32>
    %85 = vector.broadcast %6 : vector<1x32xf32> to vector<16x32xf32>
    %86 = arith.mulf %84, %85 : vector<16x32xf32>
    %87 = vector.broadcast %7 : vector<1x32xf32> to vector<16x32xf32>
    %88 = arith.addf %86, %87 : vector<16x32xf32>
    %cst_30 = arith.constant dense<0.000000e+00> : vector<16x64xf32>
    %89 = tpu.matmul %88, %8, %cst_30 {dimension_numbers = #tpu.dot_dimension_numbers<[1], [0], [0], [1], [0, 0, 1, 1], [], []>} : vector<16x32xf32>, vector<32x64xf32>, vector<16x64xf32> -> vector<16x64xf32>
    %90 = vector.broadcast %9 : vector<1x64xf32> to vector<16x64xf32>
    %91 = arith.addf %89, %90 : vector<16x64xf32>
    %92 = arith.mulf %91, %91 : vector<16x64xf32>
    %93 = arith.mulf %91, %92 : vector<16x64xf32>
    %cst_31 = arith.constant 4.471500e-02 : f32
    %94 = vector.broadcast %cst_31 : f32 to vector<16x64xf32>
    %95 = arith.mulf %94, %93 : vector<16x64xf32>
    %96 = arith.addf %91, %95 : vector<16x64xf32>
    %cst_32 = arith.constant 0.797884583 : f32
    %97 = vector.broadcast %cst_32 : f32 to vector<16x64xf32>
    %98 = arith.mulf %97, %96 : vector<16x64xf32>
    %99 = math.tanh %98 : vector<16x64xf32>
    %cst_33 = arith.constant 1.000000e+00 : f32
    %100 = vector.broadcast %cst_33 : f32 to vector<16x64xf32>
    %101 = arith.addf %100, %99 : vector<16x64xf32>
    %cst_34 = arith.constant 5.000000e-01 : f32
    %102 = vector.broadcast %cst_34 : f32 to vector<16x64xf32>
    %103 = arith.mulf %102, %101 : vector<16x64xf32>
    %104 = arith.mulf %91, %103 : vector<16x64xf32>
    %cst_35 = arith.constant dense<0.000000e+00> : vector<16x32xf32>
    %105 = tpu.matmul %104, %10, %cst_35 {dimension_numbers = #tpu.dot_dimension_numbers<[1], [0], [0], [1], [0, 0, 1, 1], [], []>} : vector<16x64xf32>, vector<64x32xf32>, vector<16x32xf32> -> vector<16x32xf32>
    %106 = vector.broadcast %11 : vector<1x32xf32> to vector<16x32xf32>
    %107 = arith.addf %105, %106 : vector<16x32xf32>
    %108 = arith.addf %88, %107 : vector<16x32xf32>
    %cst_36 = arith.constant dense<0.000000e+00> : vector<16xf32>
    %109 = vector.multi_reduction <add>, %108, %cst_36 [1] : vector<16x32xf32> to vector<16xf32>
    %110 = vector.shape_cast %109 : vector<16xf32> to vector<16x1xf32>
    %cst_37 = arith.constant 3.200000e+01 : f32
    %111 = vector.broadcast %cst_37 : f32 to vector<16x1xf32>
    %112 = arith.divf %110, %111 : vector<16x1xf32>
    %113 = vector.broadcast %112 : vector<16x1xf32> to vector<16x32xf32>
    %114 = arith.subf %108, %113 : vector<16x32xf32>
    %115 = arith.mulf %114, %114 : vector<16x32xf32>
    %cst_38 = arith.constant dense<0.000000e+00> : vector<16xf32>
    %116 = vector.multi_reduction <add>, %115, %cst_38 [1] : vector<16x32xf32> to vector<16xf32>
    %117 = vector.shape_cast %116 : vector<16xf32> to vector<16x1xf32>
    %cst_39 = arith.constant 3.200000e+01 : f32
    %118 = vector.broadcast %cst_39 : f32 to vector<16x1xf32>
    %119 = arith.divf %117, %118 : vector<16x1xf32>
    %120 = vector.broadcast %112 : vector<16x1xf32> to vector<16x32xf32>
    %121 = arith.subf %108, %120 : vector<16x32xf32>
    %cst_40 = arith.constant 9.99999974E-6 : f32
    %122 = vector.broadcast %cst_40 : f32 to vector<16x1xf32>
    %123 = arith.addf %119, %122 : vector<16x1xf32>
    %124 = math.rsqrt %123 : vector<16x1xf32>
    %125 = vector.broadcast %124 : vector<16x1xf32> to vector<16x32xf32>
    %126 = arith.mulf %121, %125 : vector<16x32xf32>
    %127 = vector.broadcast %12 : vector<1x32xf32> to vector<16x32xf32>
    %128 = arith.mulf %126, %127 : vector<16x32xf32>
    %129 = vector.broadcast %13 : vector<1x32xf32> to vector<16x32xf32>
    %130 = arith.addf %128, %129 : vector<16x32xf32>
    %cst_41 = arith.constant dense<0.000000e+00> : vector<16x32xf32>
    %131 = tpu.matmul %130, %14, %cst_41 {dimension_numbers = #tpu.dot_dimension_numbers<[1], [0], [0], [1], [0, 0, 1, 1], [], []>} : vector<16x32xf32>, vector<32x32xf32>, vector<16x32xf32> -> vector<16x32xf32>
    %132 = vector.broadcast %15 : vector<1x32xf32> to vector<16x32xf32>
    %133 = arith.addf %131, %132 : vector<16x32xf32>
    %134 = arith.mulf %133, %133 : vector<16x32xf32>
    %135 = arith.mulf %133, %134 : vector<16x32xf32>
    %cst_42 = arith.constant 4.471500e-02 : f32
    %136 = vector.broadcast %cst_42 : f32 to vector<16x32xf32>
    %137 = arith.mulf %136, %135 : vector<16x32xf32>
    %138 = arith.addf %133, %137 : vector<16x32xf32>
    %cst_43 = arith.constant 0.797884583 : f32
    %139 = vector.broadcast %cst_43 : f32 to vector<16x32xf32>
    %140 = arith.mulf %139, %138 : vector<16x32xf32>
    %141 = math.tanh %140 : vector<16x32xf32>
    %cst_44 = arith.constant 1.000000e+00 : f32
    %142 = vector.broadcast %cst_44 : f32 to vector<16x32xf32>
    %143 = arith.addf %142, %141 : vector<16x32xf32>
    %cst_45 = arith.constant 5.000000e-01 : f32
    %144 = vector.broadcast %cst_45 : f32 to vector<16x32xf32>
    %145 = arith.mulf %144, %143 : vector<16x32xf32>
    %146 = arith.mulf %133, %145 : vector<16x32xf32>
    %cst_46 = arith.constant dense<0.000000e+00> : vector<16x8xf32>
    %147 = tpu.matmul %146, %16, %cst_46 {dimension_numbers = #tpu.dot_dimension_numbers<[1], [0], [0], [1], [0, 0, 1, 1], [], []>} : vector<16x32xf32>, vector<32x8xf32>, vector<16x8xf32> -> vector<16x8xf32>
    %148 = vector.broadcast %17 : vector<1x8xf32> to vector<16x8xf32>
    %149 = arith.addf %147, %148 : vector<16x8xf32>
    %c0_47 = arith.constant 0 : index
    %c0_48 = arith.constant 0 : index
    %150 = vector.load %arg1[%c0_47, %c0_48] : memref<16x8xf32, #tpu.memory_space<vmem>>, vector<16x8xf32>
    tpu.vector_store %arg1[%c0_47, %c0_48], %149 {strides = array<i32>} : memref<16x8xf32, #tpu.memory_space<vmem>>, vector<16x8xf32>,
    return
  }
}

</mosaic_0001>

<bundles_post_ra>
// kernel: tpu_custom_call.1
= control target key start
LH: loop header
LB: loop body
LE: loop exit
PB: predicated region body
PF: predicated region fallthrough
CT: control target
= control target key end

     0   :  { %6 = vsyncpa [#allocation3], 0  ;;  %s1239_s9 = smov [#allocation2]   ;;  %s1240_s11 = smov 128   ;;  %s1406_s0 = inlined_call_operand.hbm [shape: f32[264,128], index: 0, kind: input, shape index: {}]   ;;  %s1407_s1 = inlined_call_operand.vmem [shape: f32[16,8], index: 1, kind: output, shape index: {}]  }
   0x1   :  { %s11_s8 = sshll.u32 %s1406_s0, 4  ;;  %s13_s10 = sshll.u32 %s1239_s9, 4  ;;  %s12_s8 = int_to_ptr.hbm [resolvable:$true] %s11_s8  ;;  %s14_s10 = int_to_ptr.vmem [resolvable:$true] %s13_s10 }
   0x2   :  { %s1241_s12 = smov 8  }
   0x3   :  { %19 = dma.hbm_to_vmem [thread:$0]  %s12_s8, 4224, %s14_s10, [#allocation3], %s1240_s11, %s1240_s11, %s1241_s12  }
   0x4   :  { %1237 = dma.done.wait [#allocation3], 4224  }
   0x5   :  { %1238 = vsyncadd [#allocation3], 4294963072  ;;  %vm67_vm0 = vcmask 64512   ;;  %v24_v0 = vld [vmem:[#allocation2] sm:$0xff]  ;;  %v64_v1 = vld [vmem:[#allocation2 + $0xf8] sm:$0xff]  ;;  %vm98_vm1 = vcmask 261120  }
   0x6   :  { %v65_v2 = vld [vmem:[#allocation2 + $0x100] sm:$0xff]  ;;  %89 = vmatpush.msra.mxu0 %v24_v0  ;;  %1125 = vmatpush.msra.mxu2 %v24_v0  ;;  %v28_v4 = vld [vmem:[#allocation2 + $0x18] sm:$0xff]  ;;  %v27_v5 = vld [vmem:[#allocation2 + $0x10] sm:$0xff]  ;;  %s1242_s0 = smov 112   ;;  %s1243_s13 = smov 104  }
   0x7   :  { %v29_v3 = vld [vmem:[#allocation2 + $0x20] sm:$0xff]  ;;  %1087 = vmatmul.msk.f32.vlgmr.msra.gmra.mxu0 %vm67_vm0, %v64_v1  ;;  %1088 = vmatmul.msk.f32.vlgmr.msra.gmra.mxu2 %vm67_vm0, %v65_v2  ;;  %v26_v6 = vld [vmem:[#allocation2 + $0x8] sm:$0xff]  ;;  %s1244_s14 = smov 120   ;;  %s1245_s15 = smov 96  }
   0x8   :  { %117 = vmatpush.msra.mxu1 %v29_v3  ;;  %v1152_v7 = vld [vmem:[#allocation2 + $0xe8] ss:$0 sm:$0xff]  ;;  %v1153_v12 = vld [vmem:[#allocation2 + $0xe9] ss:$0 sm:$0xff]  ;;  %s1246_s16 = smov 64   ;;  %s1247_s17 = smov 16  }
   0x9   :  { %s1248_s18 = smov 24  }
   0xa   :  { %118 = vmatpush.msra.mxu1 %v28_v4 }
   0xc   :  { %119 = vmatpush.msra.mxu1 %v27_v5 }
   0xe   :  { %120 = vmatpush.msra.mxu1 %v26_v6 }
  0x84   :  { %v91_v8 = vpop.f32.mrf.mxu0 }
  0x85   :  { %v1266_v9 = vadd.f32 %v1152_v7, %v91_v8 }
  0x87   :  { %1089 = vmatmul.msk.f32.vlgmr.msra.gmra.mxu1 %vm98_vm1, %v1266_v9 }
  0x8a   :  { %v94_v10 = vpop.f32.mrf.mxu2 }
  0x8b   :  { %v1270_v11 = vadd.f32 %v1152_v7, %v94_v10 }
  0x8f   :  { %1090 = vmatmul.msk.f32.gmra.mxu1 %vm98_vm1, %v1270_v11 }
 0x104   :  { %v122_v13 = vpop.f32.mrf.mxu1 }
 0x105   :  { %v123_v14 = vadd.f32 %v1153_v12, %v122_v13 }
 0x107   :  { %134 = vrot.lane.b32.xlu2 %v123_v14, %s1242_s0  ;;  %138 = vrot.lane.b32.xlu1 %v123_v14, %s1243_s13 }
 0x108   :  { %130 = vrot.lane.b32.xlu0 %v123_v14, %s1244_s14 }
 0x10c   :  { %v125_v15 = vpop.f32.mrf.mxu1 }
 0x10d   :  { %v1274_v16 = vadd.f32 %v1153_v12, %v125_v15 }
 0x10f   :  { %140 = vrot.lane.b32.xlu2 %v1274_v16, %s1243_s13  ;;  %136 = vrot.lane.b32.xlu1 %v1274_v16, %s1242_s0 }
 0x110   :  { %132 = vrot.lane.b32.xlu0 %v1274_v16, %s1244_s14 }
 0x117   :  { %168 = vrot.lane.b32.xlu1 %v1274_v16, %s1245_s15 }
 0x118   :  { %142 = vrot.lane.b32.xlu0 %v123_v14, %s1245_s15 }
 0x161   :  { %v135_v17 = vpop.permute.xlu2 %134 }
 0x169   :  { %v1283_v20 = vpop.permute.xlu2 %140 }
 0x179   :  { %v1280_v18 = vpop.permute.xlu1 %138 }
 0x17a   :  { %v131_v19 = vpop.permute.xlu0 %130  ;;  %298 = vrot.lane.b32.xlu1 %v1280_v18, %s1245_s15  ;;  %v1142_v54 = vpack.i.bf16 %v1280_v18, %v1274_v16 }
 0x17b   :  { %194 = vrot.lane.b32.xlu2 %v131_v19, %s1245_s15  ;;  %v1137_v23 = vpack.i.bf16 %v123_v14, %v131_v19 }
 0x181   :  { %v1285_v21 = vpop.permute.xlu1 %136 }
 0x182   :  { %v133_v22 = vpop.permute.xlu0 %132  ;;  %324 = vrot.lane.b32.xlu1 %v1283_v20, %s1245_s15 }
 0x183   :  { %272 = vrot.lane.b32.xlu2 %v1285_v21, %s1245_s15  ;;  %220 = vrot.lane.b32.xlu0 %v133_v22, %s1245_s15  ;;  %v1147_v41 = vpack.i.bf16 %v133_v22, %v135_v17 }
 0x189   :  { %v169_v24 = vpop.permute.xlu1 %168 }
 0x18a   :  { %v143_v25 = vpop.permute.xlu0 %142  ;;  %1093 = vmatpush.xpose.msk.msra.mxu3 %vm67_vm0, %v169_v24 }
 0x18b   :  { %1138 = vrot.lane.b32.xlu2 %v1137_v23, %s1246_s16  ;;  %246 = vrot.lane.b32.xlu0 %v135_v17, %s1245_s15 }
 0x18c   :  { %1091 = vmatpush.xpose.msk.msrb.mxu2 %vm67_vm0, %v143_v25 }
 0x18d   :  { %1094 = vmatmul.msk.f32.vlgmr.msra.gmra.mxu3 %vm67_vm0, %v1274_v16 }
 0x18f   :  { %1092 = vmatmul.msk.f32.vlgmr.msrb.gmra.mxu2 %vm67_vm0, %v123_v14 }
 0x1d5   :  { %v195_v26 = vpop.permute.xlu2 %194 }
 0x1d6   :  { %1095 = vmatpush.xpose.msk.msra.mxu2 %vm67_vm0, %v195_v26 }
 0x1d9   :  { %1096 = vmatmul.msk.f32.vlgmr.msra.gmra.mxu2 %vm67_vm0, %v131_v19 }
 0x1dd   :  { %v273_v27 = vpop.permute.xlu2 %272 }
 0x1de   :  { %1101 = vmatpush.xpose.msk.msrb.mxu2 %vm67_vm0, %v273_v27 }
 0x1e1   :  { %1102 = vmatmul.msk.f32.vlgmr.msrb.gmra.mxu2 %vm67_vm0, %v1285_v21 }
 0x1e5   :  { %v1139_v30 = vpop.permute.xlu2 %1138 }
 0x1e6   :  { %v1140_v32 = vunpack.i.l.bf16 %v1139_v30  ;;  %v1141_v33 = vunpack.i.h.bf16 %v1139_v30 }
 0x1ec   :  { %v299_v28 = vpop.permute.xlu1 %298 }
 0x1f4   :  { %v325_v29 = vpop.permute.xlu1 %324 }
 0x1f5   :  { %v221_v31 = vpop.permute.xlu0 %220  ;;  %1105 = vmatpush.xpose.msk.msrb.mxu1 %vm67_vm0, %v325_v29 }
 0x1f6   :  { %1097 = vmatpush.xpose.msk.msrb.mxu3 %vm67_vm0, %v221_v31 }
 0x1f8   :  { %1106 = vmatmul.msk.f32.vlgmr.msrb.gmra.mxu1 %vm67_vm0, %v1283_v20 }
 0x1f9   :  { %1098 = vmatmul.msk.f32.vlgmr.msrb.gmra.mxu3 %vm67_vm0, %v133_v22 }
 0x1fa   :  { %1103 = vmatpush.xpose.msk.msra.mxu3 %vm67_vm0, %v299_v28 }
 0x1fd   :  { %v247_v34 = vpop.permute.xlu0 %246 }
 0x1fe   :  { %471 = vmatpush.msrb.mxu3 %v1140_v32  ;;  %1099 = vmatpush.xpose.msk.msrb.mxu0 %vm67_vm0, %v247_v34 }
 0x201   :  { %1100 = vmatmul.msk.f32.vlgmr.msrb.gmra.mxu0 %vm67_vm0, %v135_v17  ;;  %1104 = vmatmul.msk.f32.vlgmr.msra.gmra.mxu3 %vm67_vm0, %v1280_v18 }
 0x202   :  { %419 = vmatpush.msra.mxu0 %v1141_v33 }
 0x210   :  { %v1310_v35 = vpop.f32.mrf.mxu3 }
 0x211   :  { %v353_v36 = vsel %vm67_vm0, %v1310_v35, -inf }
 0x212   :  { %v165_v37 = vpop.f32.mrf.mxu2  ;;  %354 = vmax.xlane.f32.xlu1 %v353_v36 }
 0x213   :  { %v350_v38 = vsel %vm67_vm0, %v165_v37, -inf }
 0x214   :  { %351 = vmax.xlane.f32.xlu0 %v350_v38 }
 0x25c   :  { %v217_v39 = vpop.f32.mrf.mxu2 }
 0x25d   :  { %v356_v40 = vsel %vm67_vm0, %v217_v39, -inf }
 0x25e   :  { %357 = vmax.xlane.f32.xlu2 %v356_v40 }
 0x264   :  { %v295_v51 = vpop.f32.mrf.mxu2 }
 0x265   :  { %v365_v52 = vsel %vm67_vm0, %v295_v51, -inf }
 0x275   :  { %v347_v46 = vpop.f32.mrf.mxu1 }
 0x276   :  { %1148 = vrot.lane.b32.xlu2 %v1147_v41, %s1246_s16  ;;  %v371_v48 = vsel %vm67_vm0, %v347_v46, -inf }
 0x27c   :  { %v243_v42 = vpop.f32.mrf.mxu3 }
 0x27d   :  { %v359_v43 = vsel %vm67_vm0, %v243_v42, -inf }
 0x27e   :  { %360 = vmax.xlane.f32.xlu1 %v359_v43  ;;  %v269_v44 = vpop.f32.mrf.mxu0 }
 0x27f   :  { %v362_v45 = vsel %vm67_vm0, %v269_v44, -inf }
 0x280   :  { %363 = vmax.xlane.f32.xlu0 %v362_v45 }
 0x284   :  { %v321_v55 = vpop.f32.mrf.mxu3 }
 0x285   :  { %v368_v56 = vsel %vm67_vm0, %v321_v55, -inf  ;;  %v355_v1 = vpop.xlane.xlu1 %354 }
 0x286   :  { %v375_v15 = vsub.f32 %v1310_v35, %v355_v1 }
 0x287   :  { %v352_v47 = vpop.xlane.xlu0 %351 }
 0x288   :  { %v374_v49 = vsub.f32 %v165_v37, %v352_v47  ;;  %372 = vmax.xlane.f32.xlu0 %v371_v48  ;;  %v384_v18 = vmul.f32 1.442695, %v375_v15 }
 0x28a   :  { %v382_v50 = vmul.f32 1.442695, %v374_v49 }
 0x28c   :  { %1163 = vpow2.f32 %v382_v50 }
 0x290   :  { %366 = vmax.xlane.f32.xlu0 %v365_v52 }
 0x292   :  { %v1321_v53 = vpop.eup %1163 }
 0x293   :  { %1107 = vmatmul.msk.f32.vlgmr.msra.gmra.mxu0 %vm67_vm0, %v1321_v53  ;;  %v606_v38 = vsel %vm67_vm0, %v1321_v53, 0.0 }
 0x297   :  { %1143 = vrot.lane.b32.xlu1 %v1142_v54, %s1246_s16 }
 0x29f   :  { %369 = vmax.xlane.f32.xlu2 %v368_v56 }
 0x2a4   :  { %528 = vrot.lane.b32.xlu0 %v1285_v21, %s1246_s16 }
 0x2b7   :  { %580 = vrot.lane.b32.xlu2 %v1283_v20, %s1246_s16 }
 0x2d1   :  { %v358_v57 = vpop.xlane.xlu2 %357 }
 0x2d2   :  { %v376_v58 = vsub.f32 %v217_v39, %v358_v57 }
 0x2d4   :  { %v386_v59 = vmul.f32 1.442695, %v376_v58 }
 0x2d6   :  { %1165 = vpow2.f32 %v386_v59 }
 0x2d9   :  { %v1149_v60 = vpop.permute.xlu2 %1148 }
 0x2da   :  { %v1151_v61 = vunpack.i.h.bf16 %v1149_v60  ;;  %v1150_v62 = vunpack.i.l.bf16 %v1149_v60 }
 0x2dc   :  { %v1166_v63 = vpop.eup %1165  ;;  %497 = vmatpush.msra.mxu1 %v1151_v61  ;;  %523 = vmatpush.msrb.mxu0 %v1150_v62 }
 0x2dd   :  { %1109 = vmatmul.msk.f32.vlgmr.msrb.gmra.mxu3 %vm67_vm0, %v1166_v63  ;;  %v612_v0 = vsel %vm67_vm0, %v1166_v63, 0.0 }
 0x2de   :  { %613 = vadd.xlane.f32.xlu1 %v612_v0 }
 0x2f1   :  { %v361_v2 = vpop.xlane.xlu1 %360 }
 0x2f2   :  { %v377_v3 = vsub.f32 %v243_v42, %v361_v2 }
 0x2f3   :  { %v364_v4 = vpop.xlane.xlu0 %363 }
 0x2f4   :  { %v388_v5 = vmul.f32 1.442695, %v377_v3  ;;  %v378_v6 = vsub.f32 %v269_v44, %v364_v4 }
 0x2f6   :  { %1167 = vpow2.f32 %v388_v5  ;;  %v390_v7 = vmul.f32 1.442695, %v378_v6 }
 0x2f8   :  { %1169 = vpow2.f32 %v390_v7 }
 0x2fb   :  { %v373_v8 = vpop.xlane.xlu0 %372 }
 0x2fc   :  { %v1168_v10 = vpop.eup %1167  ;;  %v381_v12 = vsub.f32 %v347_v46, %v373_v8 }
 0x2fd   :  { %1110 = vmatmul.msk.f32.vlgmr.msra.gmra.mxu1 %vm67_vm0, %v1168_v10  ;;  %v615_v13 = vsel %vm67_vm0, %v1168_v10, 0.0 }
 0x2fe   :  { %v1170_v14 = vpop.eup %1169  ;;  %v396_v16 = vmul.f32 1.442695, %v381_v12  ;;  %616 = vadd.xlane.f32.xlu1 %v615_v13 }
 0x2ff   :  { %1111 = vmatmul.msk.f32.vlgmr.msrb.gmra.mxu0 %vm67_vm0, %v1170_v14  ;;  %v618_v17 = vsel %vm67_vm0, %v1170_v14, 0.0 }
 0x300   :  { %1171 = vpow2.f32 %v396_v16  ;;  %619 = vadd.xlane.f32.xlu2 %v618_v17 }
 0x301   :  { %1173 = vpow2.f32 %v384_v18 }
 0x303   :  { %v367_v19 = vpop.xlane.xlu0 %366 }
 0x304   :  { %v379_v20 = vsub.f32 %v295_v51, %v367_v19 }
 0x306   :  { %v1172_v21 = vpop.eup %1171  ;;  %v392_v22 = vmul.f32 1.442695, %v379_v20 }
 0x307   :  { %v627_v23 = vsel %vm67_vm0, %v1172_v21, 0.0  ;;  %v1174_v27 = vpop.eup %1173 }
 0x308   :  { %1175 = vpow2.f32 %v392_v22  ;;  %628 = vadd.xlane.f32.xlu1 %v627_v23  ;;  %v609_v34 = vsel %vm67_vm0, %v1174_v27, 0.0 }
 0x309   :  { %v1144_v24 = vpop.permute.xlu1 %1143 }
 0x30a   :  { %v1146_v25 = vunpack.i.h.bf16 %v1144_v24  ;;  %v1145_v26 = vunpack.i.l.bf16 %v1144_v24 }
 0x30c   :  { %445 = vmatpush.msra.mxu2 %v1145_v26  ;;  %575 = vmatpush.msra.mxu3 %v1146_v25 }
 0x30d   :  { %1108 = vmatmul.msk.f32.vlgmr.msra.gmra.mxu2 %vm67_vm0, %v1174_v27 }
 0x30e   :  { %v1176_v28 = vpop.eup %1175 }
 0x30f   :  { %v621_v29 = vsel %vm67_vm0, %v1176_v28, 0.0 }
 0x310   :  { %622 = vadd.xlane.f32.xlu2 %v621_v29  ;;  %v1351_v59 = vpop.f32.mrf.mxu0 }
 0x312   :  { %v370_v30 = vpop.xlane.xlu2 %369 }
 0x313   :  { %v380_v31 = vsub.f32 %v321_v55, %v370_v30 }
 0x315   :  { %v394_v32 = vmul.f32 1.442695, %v380_v31 }
 0x316   :  { %v529_v33 = vpop.permute.xlu0 %528 }
 0x317   :  { %1177 = vpow2.f32 %v394_v32  ;;  %549 = vmatpush.msrb.mxu2 %v529_v33 }
 0x318   :  { %610 = vadd.xlane.f32.xlu2 %v609_v34  ;;  %1112 = vmatmul.msk.f32.vlgmr.msrb.gmra.mxu2 %vm67_vm0, %v1176_v28 }
 0x31a   :  { %v581_v35 = vpop.permute.xlu2 %580 }
 0x31b   :  { %601 = vmatpush.msrb.mxu1 %v581_v35 }
 0x31c   :  { %1114 = vmatmul.msk.f32.vlgmr.msrb.gmra.mxu1 %vm67_vm0, %v1172_v21 }
 0x31d   :  { %v1178_v36 = vpop.eup %1177 }
 0x31e   :  { %1113 = vmatmul.msk.f32.vlgmr.msra.gmra.mxu3 %vm67_vm0, %v1178_v36  ;;  %v624_v37 = vsel %vm67_vm0, %v1178_v36, 0.0 }
 0x31f   :  { %625 = vadd.xlane.f32.xlu0 %v624_v37 }
 0x327   :  { %607 = vadd.xlane.f32.xlu0 %v606_v38 }
 0x351   :  { %v614_v39 = vpop.xlane.xlu1 %613 }
 0x352   :  { %1179 = vrcp.f32 %v614_v39  ;;  %v671_v43 = vand.u32 2147483648, %v614_v39  ;;  %v669_v45 = vand.u32 2147483647, %v614_v39  ;;  %vm665_vm3 = vweird.f32 %v614_v39 }
 0x354   :  { %v672_v47 = vor.u32 1.1754944e-38, %v671_v43  ;;  %vm670_vm5 = vcmp.eq.f32.partialorder %v669_v45, 8.507059e+37 }
 0x358   :  { %v1180_v40 = vpop.eup %1179 }
 0x359   :  { %v661_v41 = vmul.f32 %v1180_v40, %v614_v39  ;;  %vm666_vm2 = vweird.f32 %v1180_v40 }
 0x35a   :  { %vm667_vm4 = vmor %vm665_vm3, %vm666_vm2 }
 0x35b   :  { %v662_v42 = vsub.f32 1.0, %v661_v41 }
 0x35d   :  { %v663_v44 = vmul.f32 %v1180_v40, %v662_v42 }
 0x35f   :  { %v664_v46 = vadd.f32 %v1180_v40, %v663_v44 }
 0x360   :  { %v473_v49 = vpop.f32.mrf.mxu3 }
 0x361   :  { %v668_v48 = vsel %vm667_vm4, %v1180_v40, %v664_v46 }
 0x362   :  { %v673_v50 = vsel %vm670_vm5, %v672_v47, %v668_v48 }
 0x363   :  { %v674_v51 = vmul.f32 %v673_v50, %v473_v49 }
 0x365   :  { %752 = vrot.lane.b32.xlu1 %v674_v51, %s1241_s12 }
 0x371   :  { %v617_v52 = vpop.xlane.xlu1 %616 }
 0x372   :  { %1181 = vrcp.f32 %v617_v52  ;;  %v686_v6 = vand.u32 2147483648, %v617_v52  ;;  %vm680_vm11 = vweird.f32 %v617_v52  ;;  %v684_v10 = vand.u32 2147483647, %v617_v52 }
 0x373   :  { %v620_v53 = vpop.xlane.xlu2 %619 }
 0x374   :  { %1183 = vrcp.f32 %v620_v53  ;;  %v701_v61 = vand.u32 2147483648, %v620_v53  ;;  %v699_v0 = vand.u32 2147483647, %v620_v53  ;;  %vm695_vm7 = vweird.f32 %v620_v53 }
 0x375   :  { %v687_v14 = vor.u32 1.1754944e-38, %v686_v6  ;;  %vm685_vm13 = vcmp.eq.f32.partialorder %v684_v10, 8.507059e+37 }
 0x376   :  { %v702_v2 = vor.u32 1.1754944e-38, %v701_v61  ;;  %vm700_vm10 = vcmp.eq.f32.partialorder %v699_v0, 8.507059e+37  ;;  %v32_v61 = vld [vmem:[#allocation2 + $0x30] sm:$0xff] }
 0x378   :  { %v1182_v54 = vpop.eup %1181 }
 0x379   :  { %v676_v55 = vmul.f32 %v1182_v54, %v617_v52  ;;  %vm681_vm9 = vweird.f32 %v1182_v54 }
 0x37a   :  { %v1184_v56 = vpop.eup %1183  ;;  %vm682_vm12 = vmor %vm680_vm11, %vm681_vm9  ;;  %v499_v18 = vpop.f32.mrf.mxu1 }
 0x37b   :  { %v677_v57 = vsub.f32 1.0, %v676_v55  ;;  %v691_v58 = vmul.f32 %v1184_v56, %v620_v53  ;;  %vm696_vm6 = vweird.f32 %v1184_v56  ;;  %v629_v19 = vpop.xlane.xlu1 %628 }
 0x37c   :  { %vm697_vm8 = vmor %vm695_vm7, %vm696_vm6  ;;  %v525_v7 = vpop.f32.mrf.mxu0  ;;  %v746_v50 = vand.u32 2147483648, %v629_v19  ;;  %vm740_vm9 = vweird.f32 %v629_v19  ;;  %v744_v51 = vand.u32 2147483647, %v629_v19 }
 0x37d   :  { %v692_v60 = vsub.f32 1.0, %v691_v58  ;;  %v678_v62 = vmul.f32 %v1182_v54, %v677_v57  ;;  %v34_v57 = vld [vmem:[#allocation2 + $0x40] sm:$0xff]  ;;  %v33_v58 = vld [vmem:[#allocation2 + $0x38] sm:$0xff] }
 0x37e   :  { %vm745_vm11 = vcmp.eq.f32.partialorder %v744_v51, 8.507059e+37  ;;  %801 = vmatpush.msra.mxu0 %v34_v57 }
 0x37f   :  { %v693_v63 = vmul.f32 %v1184_v56, %v692_v60  ;;  %v679_v3 = vadd.f32 %v1182_v54, %v678_v62  ;;  %v31_v62 = vld [vmem:[#allocation2 + $0x28] sm:$0xff] }
 0x380   :  { %802 = vmatpush.msra.mxu0 %v33_v58 }
 0x381   :  { %v694_v1 = vadd.f32 %v1184_v56, %v693_v63  ;;  %v683_v13 = vsel %vm682_vm12, %v1182_v54, %v679_v3  ;;  %v747_v54 = vor.u32 1.1754944e-38, %v746_v50 }
 0x382   :  { %v688_v16 = vsel %vm685_vm13, %v687_v14, %v683_v13  ;;  %803 = vmatpush.msra.mxu0 %v32_v61  ;;  %v40_v61 = vld [vmem:[#allocation2 + $0x58] sm:$0xff] }
 0x383   :  { %v698_v4 = vsel %vm697_vm8, %v1184_v56, %v694_v1  ;;  %v623_v5 = vpop.xlane.xlu2 %622  ;;  %v689_v20 = vmul.f32 %v688_v16, %v499_v18 }
 0x384   :  { %v703_v8 = vsel %vm700_vm10, %v702_v2, %v698_v4  ;;  %1185 = vrcp.f32 %v623_v5  ;;  %v716_v27 = vand.u32 2147483648, %v623_v5  ;;  %vm710_vm15 = vweird.f32 %v623_v5  ;;  %804 = vmatpush.msra.mxu0 %v31_v62  ;;  %v39_v62 = vld [vmem:[#allocation2 + $0x50] sm:$0xff] }
 0x385   :  { %v704_v12 = vmul.f32 %v703_v8, %v525_v7  ;;  %1187 = vrcp.f32 %v629_v19  ;;  %v714_v28 = vand.u32 2147483647, %v623_v5 }
 0x386   :  { %v717_v32 = vor.u32 1.1754944e-38, %v716_v27 }
 0x387   :  { %760 = vrot.lane.b32.xlu0 %v704_v12, %s1247_s17  ;;  %vm715_vm3 = vcmp.eq.f32.partialorder %v714_v28, 8.507059e+37 }
 0x38a   :  { %v1186_v15 = vpop.eup %1185 }
 0x38b   :  { %v706_v17 = vmul.f32 %v1186_v15, %v623_v5  ;;  %vm711_vm14 = vweird.f32 %v1186_v15  ;;  %v1188_v26 = vpop.eup %1187  ;;  %v611_v2 = vpop.xlane.xlu2 %610 }
 0x38c   :  { %vm712_vm2 = vmor %vm710_vm15, %vm711_vm14  ;;  %v736_v29 = vmul.f32 %v1188_v26, %v629_v19  ;;  %vm741_vm8 = vweird.f32 %v1188_v26 }
 0x38d   :  { %v707_v21 = vsub.f32 1.0, %v706_v17  ;;  %vm742_vm10 = vmor %vm740_vm9, %vm741_vm8 }
 0x38e   :  { %v737_v36 = vsub.f32 1.0, %v736_v29 }
 0x38f   :  { %754 = vrot.lane.b32.xlu0 %v689_v20, %s1241_s12  ;;  %v708_v22 = vmul.f32 %v1186_v15, %v707_v21 }
 0x390   :  { %v1355_v24 = vpop.f32.mrf.mxu2  ;;  %v738_v42 = vmul.f32 %v1188_v26, %v737_v36  ;;  %v1154_v36 = vld [vmem:[#allocation2 + $0xea] ss:$0 sm:$0xff] }
 0x391   :  { %v709_v25 = vadd.f32 %v1186_v15, %v708_v22 }
 0x392   :  { %v626_v23 = vpop.xlane.xlu0 %625  ;;  %v739_v48 = vadd.f32 %v1188_v26, %v738_v42 }
 0x393   :  { %1189 = vrcp.f32 %v626_v23  ;;  %v713_v30 = vsel %vm712_vm2, %v1186_v15, %v709_v25  ;;  %v731_v39 = vand.u32 2147483648, %v626_v23  ;;  %v729_v41 = vand.u32 2147483647, %v626_v23 }
 0x394   :  { %v718_v35 = vsel %vm715_vm3, %v717_v32, %v713_v30  ;;  %vm725_vm5 = vweird.f32 %v626_v23  ;;  %v743_v52 = vsel %vm742_vm10, %v1188_v26, %v739_v48  ;;  %vm776_vm2 = vcmask 130048  }
 0x395   :  { %v732_v44 = vor.u32 1.1754944e-38, %v731_v39  ;;  %vm730_vm7 = vcmp.eq.f32.partialorder %v729_v41, 8.507059e+37  ;;  %v748_v55 = vsel %vm745_vm11, %v747_v54, %v743_v52  ;;  %vm779_vm3 = vcmask 195584  }
 0x396   :  { %v656_v25 = vand.u32 2147483648, %v611_v2  ;;  %v654_v26 = vand.u32 2147483647, %v611_v2 }
 0x398   :  { %v657_v27 = vor.u32 1.1754944e-38, %v656_v25 }
 0x399   :  { %v1190_v31 = vpop.eup %1189  ;;  %v603_v53 = vpop.f32.mrf.mxu1 }
 0x39a   :  { %v721_v33 = vmul.f32 %v1190_v31, %v626_v23  ;;  %vm726_vm4 = vweird.f32 %v1190_v31  ;;  %v749_v56 = vmul.f32 %v748_v55, %v603_v53  ;;  %v608_v60 = vpop.xlane.xlu0 %607 }
 0x39b   :  { %v551_v34 = vpop.f32.mrf.mxu2  ;;  %vm727_vm6 = vmor %vm725_vm5, %vm726_vm4  ;;  %1191 = vrcp.f32 %v608_v60  ;;  %v641_v5 = vand.u32 2147483648, %v608_v60  ;;  %vm635_vm13 = vweird.f32 %v608_v60  ;;  %v639_v7 = vand.u32 2147483647, %v608_v60 }
 0x39c   :  { %v722_v37 = vsub.f32 1.0, %v721_v33  ;;  %v719_v38 = vmul.f32 %v718_v35, %v551_v34  ;;  %1193 = vrcp.f32 %v611_v2  ;;  %vm650_vm5 = vweird.f32 %v611_v2 }
 0x39d   :  { %v642_v12 = vor.u32 1.1754944e-38, %v641_v5  ;;  %vm640_vm15 = vcmp.eq.f32.partialorder %v639_v7, 8.507059e+37 }
 0x39e   :  { %762 = vrot.lane.b32.xlu1 %v719_v38, %s1247_s17  ;;  %v723_v40 = vmul.f32 %v1190_v31, %v722_v37 }
 0x3a0   :  { %v724_v43 = vadd.f32 %v1190_v31, %v723_v40 }
 0x3a1   :  { %v577_v46 = vpop.f32.mrf.mxu3  ;;  %v1192_v63 = vpop.eup %1191 }
 0x3a2   :  { %v728_v45 = vsel %vm727_vm6, %v1190_v31, %v724_v43  ;;  %v631_v0 = vmul.f32 %v1192_v63, %v608_v60  ;;  %vm636_vm12 = vweird.f32 %v1192_v63  ;;  %v1194_v6 = vpop.eup %1193  ;;  %v41_v60 = vld [vmem:[#allocation2 + $0x60] sm:$0xff] }
 0x3a3   :  { %v733_v47 = vsel %vm730_vm7, %v732_v44, %v728_v45  ;;  %vm637_vm14 = vmor %vm635_vm13, %vm636_vm12  ;;  %v646_v10 = vmul.f32 %v1194_v6, %v611_v2  ;;  %vm651_vm4 = vweird.f32 %v1194_v6  ;;  %vm655_vm7 = vcmp.eq.f32.partialorder %v654_v26, 8.507059e+37  ;;  %890 = vmatpush.msra.mxu2 %v41_v60  ;;  %v1158_v60 = vld [vmem:[#allocation2 + $0xee] ss:$0 sm:$0xff] }
 0x3a4   :  { %v734_v49 = vmul.f32 %v733_v47, %v577_v46  ;;  %v632_v1 = vsub.f32 1.0, %v631_v0  ;;  %vm652_vm6 = vmor %vm650_vm5, %vm651_vm4  ;;  %v1249_v44 = vmov 32.0  }
 0x3a5   :  { %v647_v14 = vsub.f32 1.0, %v646_v10  ;;  %1195 = vrcp.f32 %v1249_v44  ;;  %891 = vmatpush.msra.mxu2 %v40_v61 }
 0x3a6   :  { %768 = vrot.lane.b32.xlu2 %v734_v49, %s1248_s18  ;;  %v633_v3 = vmul.f32 %v1192_v63, %v632_v1 }
 0x3a7   :  { %v648_v19 = vmul.f32 %v1194_v6, %v647_v14  ;;  %892 = vmatpush.msra.mxu2 %v39_v62  ;;  %v1155_v14 = vld [vmem:[#allocation2 + $0xeb] ss:$0 sm:$0xff] }
 0x3a8   :  { %v634_v4 = vadd.f32 %v1192_v63, %v633_v3 }
 0x3a9   :  { %v649_v23 = vadd.f32 %v1194_v6, %v648_v19 }
 0x3aa   :  { %v638_v8 = vsel %vm637_vm14, %v1192_v63, %v634_v4  ;;  %v38_v63 = vld [vmem:[#allocation2 + $0x48] sm:$0xff] }
 0x3ab   :  { %v643_v13 = vsel %vm640_vm15, %v642_v12, %v638_v8  ;;  %v1196_v45 = vpop.eup %1195  ;;  %893 = vmatpush.msra.mxu2 %v38_v63  ;;  %vm920_vm15 = vcmask 523264  }
 0x3ac   :  { %v644_v16 = vmul.f32 %v643_v13, %v1351_v59  ;;  %v653_v59 = vsel %vm652_vm6, %v1194_v6, %v649_v23  ;;  %v821_v46 = vmul.f32 32.0, %v1196_v45  ;;  %vm825_vm8 = vweird.f32 %v1196_v45 }
 0x3ad   :  { %v658_v28 = vsel %vm655_vm7, %v657_v27, %v653_v59 }
 0x3ae   :  { %770 = vrot.lane.b32.xlu2 %v749_v56, %s1248_s18  ;;  %v659_v30 = vmul.f32 %v658_v28, %v1355_v24  ;;  %v822_v47 = vsub.f32 1.0, %v821_v46 }
 0x3b0   :  { %v823_v48 = vmul.f32 %v1196_v45, %v822_v47 }
 0x3b2   :  { %v824_v49 = vadd.f32 %v1196_v45, %v823_v48 }
 0x3b4   :  { %v1372_v50 = vsel %vm825_vm8, %v1196_v45, %v824_v49 }
 0x3d7   :  { %v753_v15 = vpop.permute.xlu1 %752 }
 0x3d8   :  { %v774_v18 = vsel %vm67_vm0, %v644_v16, %v753_v15 }
 0x3f9   :  { %v761_v17 = vpop.permute.xlu0 %760 }
 0x3fa   :  { %v777_v20 = vsel %vm776_vm2, %v774_v18, %v761_v17  ;;  %v1156_v17 = vld [vmem:[#allocation2 + $0xec] ss:$0 sm:$0xff] }
 0x400   :  { %v769_v21 = vpop.permute.xlu2 %768 }
 0x401   :  { %v780_v22 = vsel %vm779_vm3, %v777_v20, %v769_v21  ;;  %v755_v29 = vpop.permute.xlu0 %754 }
 0x402   :  { %1115 = vmatmul.msk.f32.vlgmr.msra.gmra.mxu0 %vm98_vm1, %v780_v22  ;;  %v775_v31 = vsel %vm67_vm0, %v659_v30, %v755_v29  ;;  %v50_v30 = vld [vmem:[#allocation2 + $0xa0] sm:$0xff] }
 0x403   :  { %935 = vmatpush.msrb.mxu3 %v50_v30 }
 0x408   :  { %v771_v33 = vpop.permute.xlu2 %770 }
 0x410   :  { %v763_v32 = vpop.permute.xlu1 %762 }
 0x411   :  { %v778_v34 = vsel %vm776_vm2, %v775_v31, %v763_v32  ;;  %v49_v31 = vld [vmem:[#allocation2 + $0x98] sm:$0xff]  ;;  %v48_v32 = vld [vmem:[#allocation2 + $0x90] sm:$0xff] }
 0x412   :  { %v781_v35 = vsel %vm779_vm3, %v778_v34, %v771_v33  ;;  %936 = vmatpush.msrb.mxu3 %v49_v31  ;;  %v47_v33 = vld [vmem:[#allocation2 + $0x88] sm:$0xff]  ;;  %v46_v34 = vld [vmem:[#allocation2 + $0x80] sm:$0xff] }
 0x413   :  { %1116 = vmatmul.msk.f32.gmra.mxu0 %vm98_vm1, %v781_v35  ;;  %v45_v35 = vld [vmem:[#allocation2 + $0x78] sm:$0xff] }
 0x414   :  { %937 = vmatpush.msrb.mxu3 %v48_v32 }
 0x416   :  { %938 = vmatpush.msrb.mxu3 %v47_v33  ;;  %v1159_v33 = vld [vmem:[#allocation2 + $0xef] ss:$0 sm:$0xff] }
 0x418   :  { %939 = vmatpush.msrb.mxu3 %v46_v34 }
 0x41a   :  { %940 = vmatpush.msrb.mxu3 %v45_v35 }
 0x47f   :  { %v806_v37 = vpop.f32.mrf.mxu0 }
 0x480   :  { %v807_v38 = vadd.f32 %v1154_v36, %v806_v37  ;;  %v43_v37 = vld [vmem:[#allocation2 + $0x68] sm:$0xff] }
 0x482   :  { %v812_v39 = vadd.f32 %v807_v38, %v1266_v9  ;;  %v1157_v38 = vld [vmem:[#allocation2 + $0xed] ss:$0 sm:$0xff] }
 0x484   :  { %v814_v40 = vsel %vm98_vm1, %v812_v39, 0.0 }
 0x485   :  { %815 = vadd.xlane.f32.xlu0 %v814_v40 }
 0x490   :  { %v809_v41 = vpop.f32.mrf.mxu0 }
 0x491   :  { %v810_v24 = vadd.f32 %v1154_v36, %v809_v41  ;;  %v44_v36 = vld [vmem:[#allocation2 + $0x70] sm:$0xff] }
 0x492   :  { %941 = vmatpush.msrb.mxu3 %v44_v36  ;;  %v1160_v36 = vld [vmem:[#allocation2 + $0xf0] ss:$0 sm:$0xff] }
 0x493   :  { %v813_v42 = vadd.f32 %v810_v24, %v1270_v11 }
 0x494   :  { %942 = vmatpush.msrb.mxu3 %v43_v37 }
 0x495   :  { %v817_v43 = vsel %vm98_vm1, %v813_v42, 0.0 }
 0x496   :  { %818 = vadd.xlane.f32.xlu1 %v817_v43 }
 0x4f8   :  { %v816_v9 = vpop.xlane.xlu0 %815 }
 0x4f9   :  { %v827_v51 = vmul.f32 %v1372_v50, %v816_v9 }
 0x4fb   :  { %v829_v52 = vsub.f32 %v812_v39, %v827_v51 }
 0x4fd   :  { %v831_v53 = vmul.f32 %v829_v52, %v829_v52 }
 0x4ff   :  { %v833_v11 = vsel %vm98_vm1, %v831_v53, 0.0 }
 0x500   :  { %834 = vadd.xlane.f32.xlu2 %v833_v11 }
 0x509   :  { %v819_v54 = vpop.xlane.xlu1 %818 }
 0x50a   :  { %v828_v55 = vmul.f32 %v1372_v50, %v819_v54 }
 0x50c   :  { %v830_v56 = vsub.f32 %v813_v42, %v828_v55 }
 0x50e   :  { %v832_v57 = vmul.f32 %v830_v56, %v830_v56 }
 0x510   :  { %v836_v58 = vsel %vm98_vm1, %v832_v57, 0.0 }
 0x511   :  { %837 = vadd.xlane.f32.xlu0 %v836_v58 }
 0x573   :  { %v835_v0 = vpop.xlane.xlu2 %834 }
 0x574   :  { %v839_v1 = vmul.f32 %v835_v0, %v1372_v50 }
 0x576   :  { %v841_v2 = vadd.f32 1e-05, %v839_v1 }
 0x578   :  { %1197 = vrsqrt.f32 %v841_v2  ;;  %vm849_vm10 = vweird.f32 %v841_v2 }
 0x57e   :  { %v1198_v3 = vpop.eup %1197 }
 0x57f   :  { %v844_v4 = vmul.f32 %v1198_v3, %v841_v2  ;;  %vm850_vm9 = vweird.f32 %v1198_v3 }
 0x580   :  { %vm851_vm11 = vmor %vm849_vm10, %vm850_vm9 }
 0x581   :  { %v845_v5 = vmul.f32 %v1198_v3, %v844_v4 }
 0x583   :  { %v846_v6 = vmul.f32 0.5, %v845_v5 }
 0x584   :  { %v838_v7 = vpop.xlane.xlu0 %837 }
 0x585   :  { %v847_v8 = vsub.f32 1.5, %v846_v6  ;;  %v840_v10 = vmul.f32 %v838_v7, %v1372_v50 }
 0x587   :  { %v848_v12 = vmul.f32 %v1198_v3, %v847_v8  ;;  %v842_v13 = vadd.f32 1e-05, %v840_v10 }
 0x589   :  { %v852_v15 = vsel %vm851_vm11, %v1198_v3, %v848_v12  ;;  %1199 = vrsqrt.f32 %v842_v13  ;;  %vm859_vm13 = vweird.f32 %v842_v13 }
 0x58a   :  { %v863_v16 = vmul.f32 %v852_v15, %v829_v52 }
 0x58c   :  { %v866_v18 = vmul.f32 %v1155_v14, %v863_v16 }
 0x58e   :  { %v1380_v19 = vadd.f32 %v1156_v17, %v866_v18  ;;  %v56_v18 = vld [vmem:[#allocation2 + $0xb8] sm:$0xff] }
 0x58f   :  { %v1200_v20 = vpop.eup %1199 }
 0x590   :  { %v854_v21 = vmul.f32 %v1200_v20, %v842_v13  ;;  %1117 = vmatmul.msk.f32.vlgmr.msra.gmra.mxu2 %vm98_vm1, %v1380_v19  ;;  %vm860_vm12 = vweird.f32 %v1200_v20 }
 0x591   :  { %vm861_vm14 = vmor %vm859_vm13, %vm860_vm12 }
 0x592   :  { %v855_v22 = vmul.f32 %v1200_v20, %v854_v21 }
 0x594   :  { %v856_v23 = vmul.f32 0.5, %v855_v22 }
 0x596   :  { %v857_v25 = vsub.f32 1.5, %v856_v23 }
 0x598   :  { %v858_v26 = vmul.f32 %v1200_v20, %v857_v25 }
 0x59a   :  { %v862_v59 = vsel %vm861_vm14, %v1200_v20, %v858_v26  ;;  %v54_v20 = vld [vmem:[#allocation2 + $0xa8] sm:$0xff] }
 0x59b   :  { %v864_v27 = vmul.f32 %v862_v59, %v830_v56 }
 0x59d   :  { %v867_v28 = vmul.f32 %v1155_v14, %v864_v27 }
 0x59f   :  { %v870_v29 = vadd.f32 %v1156_v17, %v867_v28  ;;  %v57_v17 = vld [vmem:[#allocation2 + $0xc0] sm:$0xff] }
 0x5a0   :  { %1021 = vmatpush.msra.mxu1 %v57_v17 }
 0x5a1   :  { %1118 = vmatmul.msk.f32.gmra.mxu2 %vm98_vm1, %v870_v29 }
 0x5a2   :  { %1022 = vmatpush.msra.mxu1 %v56_v18 }
 0x613   :  { %v895_v39 = vpop.f32.mrf.mxu2 }
 0x614   :  { %v896_v40 = vadd.f32 %v1157_v38, %v895_v39 }
 0x616   :  { %v901_v41 = vmul.f32 %v896_v40, %v896_v40 }
 0x618   :  { %v903_v24 = vmul.f32 %v901_v41, %v896_v40 }
 0x61a   :  { %v905_v42 = vmul.f32 0.044715, %v903_v24 }
 0x61c   :  { %v907_v43 = vadd.f32 %v905_v42, %v896_v40 }
 0x61e   :  { %v909_v44 = vmul.f32 0.7978846, %v907_v43 }
 0x620   :  { %1201 = vtanh.f32 %v909_v44 }
 0x624   :  { %v898_v45 = vpop.f32.mrf.mxu2 }
 0x625   :  { %v899_v46 = vadd.f32 %v1157_v38, %v898_v45 }
 0x626   :  { %v1202_v47 = vpop.eup %1201 }
 0x627   :  { %v913_v48 = vadd.f32 1.0, %v1202_v47  ;;  %v902_v49 = vmul.f32 %v899_v46, %v899_v46  ;;  %v62_v47 = vld [vmem:[#allocation2 + $0xe0] sm:$0xff] }
 0x628   :  { %1069 = vmatpush.msrb.mxu0 %v62_v47 }
 0x629   :  { %v915_v9 = vmul.f32 0.5, %v913_v48  ;;  %v904_v51 = vmul.f32 %v902_v49, %v899_v46  ;;  %v61_v48 = vld [vmem:[#allocation2 + $0xd8] sm:$0xff]  ;;  %v60_v49 = vld [vmem:[#allocation2 + $0xd0] sm:$0xff] }
 0x62a   :  { %1070 = vmatpush.msrb.mxu0 %v61_v48 }
 0x62b   :  { %v917_v52 = vmul.f32 %v915_v9, %v896_v40  ;;  %v906_v53 = vmul.f32 0.044715, %v904_v51  ;;  %v59_v9 = vld [vmem:[#allocation2 + $0xc8] sm:$0xff]  ;;  %v1161_v51 = vld [vmem:[#allocation2 + $0xf1] ss:$0 sm:$0xff] }
 0x62c   :  { %1071 = vmatpush.msrb.mxu0 %v60_v49 }
 0x62d   :  { %v908_v11 = vadd.f32 %v906_v53, %v899_v46  ;;  %1119 = vmatmul.msk.f32.vlgmr.msrb.gmra.mxu3 %vm920_vm15, %v917_v52 }
 0x62e   :  { %1072 = vmatpush.msrb.mxu0 %v59_v9 }
 0x62f   :  { %v910_v54 = vmul.f32 0.7978846, %v908_v11 }
 0x631   :  { %1203 = vtanh.f32 %v910_v54 }
 0x637   :  { %v1204_v55 = vpop.eup %1203 }
 0x638   :  { %v914_v56 = vadd.f32 1.0, %v1204_v55 }
 0x63a   :  { %v916_v57 = vmul.f32 0.5, %v914_v56 }
 0x63c   :  { %v918_v58 = vmul.f32 %v916_v57, %v899_v46 }
 0x63e   :  { %1120 = vmatmul.msk.f32.gmra.mxu3 %vm920_vm15, %v918_v58 }
 0x6b0   :  { %v944_v61 = vpop.f32.mrf.mxu3 }
 0x6b1   :  { %v945_v62 = vadd.f32 %v1158_v60, %v944_v61 }
 0x6b3   :  { %v950_v63 = vadd.f32 %v945_v62, %v1380_v19  ;;  %v55_v19 = vld [vmem:[#allocation2 + $0xb0] sm:$0xff] }
 0x6b4   :  { %1023 = vmatpush.msra.mxu1 %v55_v19 }
 0x6b5   :  { %v952_v0 = vsel %vm98_vm1, %v950_v63, 0.0 }
 0x6b6   :  { %953 = vadd.xlane.f32.xlu1 %v952_v0  ;;  %1024 = vmatpush.msra.mxu1 %v54_v20 }
 0x6c1   :  { %v947_v1 = vpop.f32.mrf.mxu3 }
 0x6c2   :  { %v948_v2 = vadd.f32 %v1158_v60, %v947_v1 }
 0x6c4   :  { %v951_v3 = vadd.f32 %v948_v2, %v870_v29 }
 0x6c6   :  { %v955_v4 = vsel %vm98_vm1, %v951_v3, 0.0 }
 0x6c7   :  { %956 = vadd.xlane.f32.xlu2 %v955_v4 }
 0x729   :  { %v954_v5 = vpop.xlane.xlu1 %953 }
 0x72a   :  { %v958_v6 = vmul.f32 %v954_v5, %v1372_v50 }
 0x72c   :  { %v960_v7 = vsub.f32 %v950_v63, %v958_v6 }
 0x72e   :  { %v962_v8 = vmul.f32 %v960_v7, %v960_v7 }
 0x730   :  { %v964_v10 = vsel %vm98_vm1, %v962_v8, 0.0 }
 0x731   :  { %965 = vadd.xlane.f32.xlu0 %v964_v10 }
 0x73a   :  { %v957_v12 = vpop.xlane.xlu2 %956 }
 0x73b   :  { %v959_v13 = vmul.f32 %v957_v12, %v1372_v50  ;;  %v1162_v12 = vld [vmem:[#allocation2 + $0xf2] ss:$0 sm:$0xff] }
 0x73d   :  { %v961_v14 = vsub.f32 %v951_v3, %v959_v13 }
 0x73f   :  { %v963_v15 = vmul.f32 %v961_v14, %v961_v14 }
 0x741   :  { %v967_v16 = vsel %vm98_vm1, %v963_v15, 0.0 }
 0x742   :  { %968 = vadd.xlane.f32.xlu1 %v967_v16 }
 0x7a4   :  { %v966_v21 = vpop.xlane.xlu0 %965 }
 0x7a5   :  { %v970_v22 = vmul.f32 %v966_v21, %v1372_v50 }
 0x7a7   :  { %v972_v23 = vadd.f32 1e-05, %v970_v22 }
 0x7a9   :  { %1205 = vrsqrt.f32 %v972_v23  ;;  %vm980_vm3 = vweird.f32 %v972_v23 }
 0x7af   :  { %v1206_v25 = vpop.eup %1205 }
 0x7b0   :  { %v975_v26 = vmul.f32 %v1206_v25, %v972_v23  ;;  %vm981_vm2 = vweird.f32 %v1206_v25 }
 0x7b1   :  { %vm982_vm4 = vmor %vm980_vm3, %vm981_vm2 }
 0x7b2   :  { %v976_v59 = vmul.f32 %v1206_v25, %v975_v26 }
 0x7b4   :  { %v977_v27 = vmul.f32 0.5, %v976_v59 }
 0x7b5   :  { %v969_v28 = vpop.xlane.xlu1 %968 }
 0x7b6   :  { %v978_v29 = vsub.f32 1.5, %v977_v27  ;;  %v971_v30 = vmul.f32 %v969_v28, %v1372_v50 }
 0x7b8   :  { %v979_v31 = vmul.f32 %v1206_v25, %v978_v29  ;;  %v973_v32 = vadd.f32 1e-05, %v971_v30 }
 0x7ba   :  { %v983_v34 = vsel %vm982_vm4, %v1206_v25, %v979_v31  ;;  %1207 = vrsqrt.f32 %v973_v32  ;;  %vm990_vm6 = vweird.f32 %v973_v32 }
 0x7bb   :  { %v994_v35 = vmul.f32 %v983_v34, %v960_v7 }
 0x7bd   :  { %v997_v37 = vmul.f32 %v1159_v33, %v994_v35 }
 0x7bf   :  { %v1000_v38 = vadd.f32 %v1160_v36, %v997_v37 }
 0x7c0   :  { %v1208_v39 = vpop.eup %1207 }
 0x7c1   :  { %v985_v40 = vmul.f32 %v1208_v39, %v973_v32  ;;  %1121 = vmatmul.msk.f32.vlgmr.msra.gmra.mxu1 %vm98_vm1, %v1000_v38  ;;  %vm991_vm5 = vweird.f32 %v1208_v39 }
 0x7c2   :  { %vm992_vm7 = vmor %vm990_vm6, %vm991_vm5 }
 0x7c3   :  { %v986_v41 = vmul.f32 %v1208_v39, %v985_v40 }
 0x7c5   :  { %v987_v24 = vmul.f32 0.5, %v986_v41 }
 0x7c7   :  { %v988_v42 = vsub.f32 1.5, %v987_v24 }
 0x7c9   :  { %v989_v50 = vmul.f32 %v1208_v39, %v988_v42 }
 0x7cb   :  { %v993_v43 = vsel %vm992_vm7, %v1208_v39, %v989_v50 }
 0x7cc   :  { %v995_v44 = vmul.f32 %v993_v43, %v961_v14 }
 0x7ce   :  { %v998_v45 = vmul.f32 %v1159_v33, %v995_v44 }
 0x7d0   :  { %v1001_v46 = vadd.f32 %v1160_v36, %v998_v45 }
 0x7d2   :  { %1122 = vmatmul.msk.f32.gmra.mxu1 %vm98_vm1, %v1001_v46 }
 0x83e   :  { %v1026_v52 = vpop.f32.mrf.mxu1 }
 0x83f   :  { %v1027_v53 = vadd.f32 %v1161_v51, %v1026_v52 }
 0x841   :  { %v1032_v11 = vmul.f32 %v1027_v53, %v1027_v53 }
 0x843   :  { %v1034_v54 = vmul.f32 %v1032_v11, %v1027_v53 }
 0x845   :  { %v1036_v55 = vmul.f32 0.044715, %v1034_v54 }
 0x847   :  { %v1038_v56 = vadd.f32 %v1036_v55, %v1027_v53 }
 0x849   :  { %v1040_v57 = vmul.f32 0.7978846, %v1038_v56 }
 0x84b   :  { %1209 = vtanh.f32 %v1040_v57 }
 0x84f   :  { %v1029_v58 = vpop.f32.mrf.mxu1 }
 0x850   :  { %v1030_v60 = vadd.f32 %v1161_v51, %v1029_v58 }
 0x851   :  { %v1210_v61 = vpop.eup %1209 }
 0x852   :  { %v1044_v62 = vadd.f32 1.0, %v1210_v61  ;;  %v1033_v63 = vmul.f32 %v1030_v60, %v1030_v60 }
 0x854   :  { %v1046_v0 = vmul.f32 0.5, %v1044_v62  ;;  %v1035_v1 = vmul.f32 %v1033_v63, %v1030_v60 }
 0x856   :  { %v1048_v2 = vmul.f32 %v1046_v0, %v1027_v53  ;;  %v1037_v3 = vmul.f32 0.044715, %v1035_v1 }
 0x858   :  { %v1039_v4 = vadd.f32 %v1037_v3, %v1030_v60  ;;  %1123 = vmatmul.msk.f32.vlgmr.msrb.gmra.mxu0 %vm98_vm1, %v1048_v2 }
 0x85a   :  { %v1041_v5 = vmul.f32 0.7978846, %v1039_v4 }
 0x85c   :  { %1211 = vtanh.f32 %v1041_v5 }
 0x862   :  { %v1212_v6 = vpop.eup %1211 }
 0x863   :  { %v1045_v7 = vadd.f32 1.0, %v1212_v6 }
 0x865   :  { %v1047_v8 = vmul.f32 0.5, %v1045_v7 }
 0x867   :  { %v1049_v10 = vmul.f32 %v1047_v8, %v1030_v60 }
 0x869   :  { %1124 = vmatmul.msk.f32.gmra.mxu0 %vm98_vm1, %v1049_v10 }
 0x8d5   :  { %v1074_v13 = vpop.f32.mrf.mxu0 }
 0x8d6   :  { %v1075_v14 = vadd.f32 %v1162_v12, %v1074_v13 }
 0x8d8   :  { %1080 = vst.msk [vmem:[%s1407_s1] sm:$0xff] %vm67_vm0, %v1075_v14 }
 0x8e6   :  { %v1077_v15 = vpop.f32.mrf.mxu0 }
 0x8e7   :  { %v1078_v16 = vadd.f32 %v1162_v12, %v1077_v15 }
 0x8e9   :  { %1081 = vst.msk [vmem:[%s1407_s1 + $0x8] sm:$0xff] %vm67_vm0, %v1078_v16 }
 0x8ea   :  { %1086 = vsyncpa [#allocation3], 1 }

</bundles_post_ra>
